<compile_context>
chip_gen: v6e
topology: v6e:2x2x1
jax: 0.10.0
libtpu: 0.0.40
codegen_flags: <defaults>
</compile_context>

<pallas_src>
import jax
import jax.numpy as jnp
from jax.experimental import pallas as pl
from jax.experimental.pallas import tpu as pltpu

STATE_DIM = 2
HIDDEN = 64
ACTION_DIM = 4
OUT_PAD = 128          # lane-dense padded output width
DEFAULT_TB = 1024      # batch tile (rows of f32) for the large-batch path


def qmodel_kernel(x_ref, w1_ref, b1_ref, w2_ref, b2_ref, w3_ref, b3_ref, o_ref):
    # x_ref: [TB, 2]   w1: [2, 64]   w2: [64, 64]   w3(padded): [64, 128]
    x = x_ref[...]

    # Layer 1 (K=2 contraction) on the VPU: two broadcast FMAs, no MXU pass.
    h1 = (x[:, 0:1] * w1_ref[0:1, :]
          + x[:, 1:2] * w1_ref[1:2, :]
          + b1_ref[...])
    h1 = jnp.maximum(h1, 0.0)                                            # [TB, 64]

    # Layer 2: proper 64x64 matmul on the MXU, f32 accumulation.
    h2 = jnp.dot(h1, w2_ref[...], preferred_element_type=jnp.float32) + b2_ref[...]
    h2 = jnp.maximum(h2, 0.0)                                            # [TB, 64]

    # Layer 3: output padded to 128 lanes -> unmasked, lane-dense stores.
    out = jnp.dot(h2, w3_ref[...], preferred_element_type=jnp.float32) + b3_ref[...]
    o_ref[...] = out.astype(o_ref.dtype)                                 # [TB, 128]


def _round_up(n, m):
    return ((n + m - 1) // m) * m


def qmodel_forward(x, params, *, tb=DEFAULT_TB):
    """x: [B, STATE_DIM] f32 -> [B, ACTION_DIM] f32."""
    w1, b1, w2, b2, w3, b3 = params
    B = x.shape[0]

    # Pick a batch tile: multiple of 8, no larger than the (padded) batch.
    TB = min(tb, _round_up(B, 8))
    B_pad = _round_up(B, TB)
    if B_pad != B:
        x = jnp.pad(x, ((0, B_pad - B), (0, 0)))   # extra rows computed & discarded

    # Zero-pad the last layer to a lane-dense 128-wide output.
    w3p = jnp.zeros((HIDDEN, OUT_PAD), w3.dtype).at[:, :ACTION_DIM].set(w3)
    b3p = jnp.zeros((1, OUT_PAD), b3.dtype).at[:, :ACTION_DIM].set(b3)

    const2d = lambda shape: pl.BlockSpec(shape, lambda i: (0, 0))  # VMEM-resident weights

    out_padded = pl.pallas_call(
        qmodel_kernel,
        out_shape=jax.ShapeDtypeStruct((B_pad, OUT_PAD), jnp.float32),
        grid=(B_pad // TB,),
        in_specs=[
            pl.BlockSpec((TB, STATE_DIM), lambda i: (i, 0)),
            const2d(w1.shape), const2d(b1.shape),
            const2d(w2.shape), const2d(b2.shape),
            const2d(w3p.shape), const2d(b3p.shape),
        ],
        out_specs=pl.BlockSpec((TB, OUT_PAD), lambda i: (i, 0)),
        compiler_params=pltpu.CompilerParams(
            dimension_semantics=("parallel",),
        ),
    )(x, w1, b1, w2, b2, w3p, b3p)

    return out_padded[:B, :ACTION_DIM]


def init_params(key):
    """Mimics PyTorch nn.Linear default init (U[-1/sqrt(fan_in), +1/sqrt(fan_in)]).

    Weights stored as [in_features, out_features]; biases as [1, out_features]."""
    keys = jax.random.split(key, 6)

    def linear(kw, kb, fan_in, fan_out):
        bound = 1.0 / jnp.sqrt(fan_in)
        w = jax.random.uniform(kw, (fan_in, fan_out), jnp.float32, -bound, bound)
        b = jax.random.uniform(kb, (1, fan_out), jnp.float32, -bound, bound)
        return w, b

    w1, b1 = linear(keys[0], keys[1], STATE_DIM, HIDDEN)
    w2, b2 = linear(keys[2], keys[3], HIDDEN, HIDDEN)
    w3, b3 = linear(keys[4], keys[5], HIDDEN, ACTION_DIM)
    return (w1, b1, w2, b2, w3, b3)


def reference_forward(x, params):
    w1, b1, w2, b2, w3, b3 = params
    h1 = jnp.maximum(x @ w1 + b1, 0.0)
    h2 = jnp.maximum(h1 @ w2 + b2, 0.0)
    return h2 @ w3 + b3


if __name__ == "__main__":
    key = jax.random.PRNGKey(0)
    pkey, xkey, xkey2 = jax.random.split(key, 3)

    params = init_params(pkey)

    # Small-batch check (B=8 — fits one 8-row tile).
    batch = 8
    x = jax.random.normal(xkey, (batch, STATE_DIM), jnp.float32)
    out = jax.block_until_ready(qmodel_forward(x, params))
    ref = reference_forward(x, params)
    assert out.shape == (batch, ACTION_DIM)
    assert jnp.allclose(out, ref, atol=1e-5, rtol=1e-5)

    # Larger / ragged batch check (exercises tiling + padding path).
    batch2 = 3000
    x2 = jax.random.normal(xkey2, (batch2, STATE_DIM), jnp.float32)
    out2 = jax.block_until_ready(qmodel_forward(x2, params))
    ref2 = reference_forward(x2, params)
    assert out2.shape == (batch2, ACTION_DIM)
    assert jnp.allclose(out2, ref2, atol=1e-4, rtol=1e-4)

    print("KERNEL_OK")
</pallas_src>

<mosaic_0001>
module attributes {stable_mosaic.version = 11 : i64} {
  func.func @qmodel_kernel(%arg0: i32, %arg1: memref<8x2xf32, #tpu.memory_space<vmem>>, %arg2: memref<2x64xf32, #tpu.memory_space<vmem>>, %arg3: memref<1x64xf32, #tpu.memory_space<vmem>>, %arg4: memref<64x64xf32, #tpu.memory_space<vmem>>, %arg5: memref<1x64xf32, #tpu.memory_space<vmem>>, %arg6: memref<64x128xf32, #tpu.memory_space<vmem>>, %arg7: memref<1x128xf32, #tpu.memory_space<vmem>>, %arg8: memref<8x128xf32, #tpu.memory_space<vmem>>) attributes {dimension_semantics = [#tpu.dimension_semantics<parallel>], iteration_bounds = array<i64: 1>, scalar_prefetch = 0 : i64, scratch_operands = 0 : i64, tpu.core_type = #tpu.core_type<tc>, window_params = [{transform_indices = @transform_0, window_bounds = array<i64: 8, 2>}, {pipeline_mode = #tpu.pipeline_mode<synchronous>, transform_indices = @transform_1, window_bounds = array<i64: 2, 64>}, {pipeline_mode = #tpu.pipeline_mode<synchronous>, transform_indices = @transform_2, window_bounds = array<i64: 1, 64>}, {pipeline_mode = #tpu.pipeline_mode<synchronous>, transform_indices = @transform_3, window_bounds = array<i64: 64, 64>}, {pipeline_mode = #tpu.pipeline_mode<synchronous>, transform_indices = @transform_4, window_bounds = array<i64: 1, 64>}, {pipeline_mode = #tpu.pipeline_mode<synchronous>, transform_indices = @transform_5, window_bounds = array<i64: 64, 128>}, {pipeline_mode = #tpu.pipeline_mode<synchronous>, transform_indices = @transform_6, window_bounds = array<i64: 1, 128>}, {transform_indices = @transform_7, window_bounds = array<i64: 8, 128>}]} {
    %c0 = arith.constant 0 : index
    %c0_0 = arith.constant 0 : index
    %0 = vector.load %arg1[%c0, %c0_0] : memref<8x2xf32, #tpu.memory_space<vmem>>, vector<8x2xf32>
    %1 = vector.extract_strided_slice %0 {offsets = [0, 0], sizes = [8, 1], strides = [1, 1]} : vector<8x2xf32> to vector<8x1xf32>
    %c0_1 = arith.constant 0 : index
    %c0_2 = arith.constant 0 : index
    %2 = vector.load %arg2[%c0_1, %c0_2] : memref<2x64xf32, #tpu.memory_space<vmem>>, vector<1x64xf32>
    %3 = vector.broadcast %1 : vector<8x1xf32> to vector<8x64xf32>
    %4 = vector.broadcast %2 : vector<1x64xf32> to vector<8x64xf32>
    %5 = arith.mulf %3, %4 : vector<8x64xf32>
    %6 = vector.extract_strided_slice %0 {offsets = [0, 1], sizes = [8, 1], strides = [1, 1]} : vector<8x2xf32> to vector<8x1xf32>
    %c1 = arith.constant 1 : index
    %c0_3 = arith.constant 0 : index
    %7 = vector.load %arg2[%c1, %c0_3] : memref<2x64xf32, #tpu.memory_space<vmem>>, vector<1x64xf32>
    %8 = vector.broadcast %6 : vector<8x1xf32> to vector<8x64xf32>
    %9 = vector.broadcast %7 : vector<1x64xf32> to vector<8x64xf32>
    %10 = arith.mulf %8, %9 : vector<8x64xf32>
    %11 = arith.addf %5, %10 : vector<8x64xf32>
    %c0_4 = arith.constant 0 : index
    %c0_5 = arith.constant 0 : index
    %12 = vector.load %arg3[%c0_4, %c0_5] : memref<1x64xf32, #tpu.memory_space<vmem>>, vector<1x64xf32>
    %13 = vector.broadcast %12 : vector<1x64xf32> to vector<8x64xf32>
    %14 = arith.addf %11, %13 : vector<8x64xf32>
    %cst = arith.constant 0.000000e+00 : f32
    %15 = vector.broadcast %cst : f32 to vector<8x64xf32>
    %16 = arith.maximumf %14, %15 : vector<8x64xf32>
    %c0_6 = arith.constant 0 : index
    %c0_7 = arith.constant 0 : index
    %17 = vector.load %arg4[%c0_6, %c0_7] : memref<64x64xf32, #tpu.memory_space<vmem>>, vector<64x64xf32>
    %cst_8 = arith.constant dense<0.000000e+00> : vector<8x64xf32>
    %18 = tpu.matmul %16, %17, %cst_8 {dimension_numbers = #tpu.dot_dimension_numbers<[1], [0], [0], [1], [0, 0, 1, 1], [], []>} : vector<8x64xf32>, vector<64x64xf32>, vector<8x64xf32> -> vector<8x64xf32>
    %c0_9 = arith.constant 0 : index
    %c0_10 = arith.constant 0 : index
    %19 = vector.load %arg5[%c0_9, %c0_10] : memref<1x64xf32, #tpu.memory_space<vmem>>, vector<1x64xf32>
    %20 = vector.broadcast %19 : vector<1x64xf32> to vector<8x64xf32>
    %21 = arith.addf %18, %20 : vector<8x64xf32>
    %cst_11 = arith.constant 0.000000e+00 : f32
    %22 = vector.broadcast %cst_11 : f32 to vector<8x64xf32>
    %23 = arith.maximumf %21, %22 : vector<8x64xf32>
    %c0_12 = arith.constant 0 : index
    %c0_13 = arith.constant 0 : index
    %24 = vector.load %arg6[%c0_12, %c0_13] : memref<64x128xf32, #tpu.memory_space<vmem>>, vector<64x128xf32>
    %cst_14 = arith.constant dense<0.000000e+00> : vector<8x128xf32>
    %25 = tpu.matmul %23, %24, %cst_14 {dimension_numbers = #tpu.dot_dimension_numbers<[1], [0], [0], [1], [0, 0, 1, 1], [], []>} : vector<8x64xf32>, vector<64x128xf32>, vector<8x128xf32> -> vector<8x128xf32>
    %c0_15 = arith.constant 0 : index
    %c0_16 = arith.constant 0 : index
    %26 = vector.load %arg7[%c0_15, %c0_16] : memref<1x128xf32, #tpu.memory_space<vmem>>, vector<1x128xf32>
    %27 = vector.broadcast %26 : vector<1x128xf32> to vector<8x128xf32>
    %28 = arith.addf %25, %27 : vector<8x128xf32>
    %c0_17 = arith.constant 0 : index
    %c0_18 = arith.constant 0 : index
    %29 = vector.load %arg8[%c0_17, %c0_18] : memref<8x128xf32, #tpu.memory_space<vmem>>, vector<8x128xf32>
    tpu.vector_store %arg8[%c0_17, %c0_18], %28 {strides = array<i32>} : memref<8x128xf32, #tpu.memory_space<vmem>>, vector<8x128xf32>,
    return
  }
  func.func @transform_0(%arg0: i32) -> (i32, i32) {
    %c0_i32 = arith.constant 0 : i32
    %c0_i32_0 = arith.constant 0 : i32
    return %arg0, %c0_i32 : i32, i32
  }
  func.func @transform_1(%arg0: i32) -> (i32, i32) {
    %c0_i32 = arith.constant 0 : i32
    %c0_i32_0 = arith.constant 0 : i32
    %c0_i32_1 = arith.constant 0 : i32
    return %c0_i32, %c0_i32_0 : i32, i32
  }
  func.func @transform_2(%arg0: i32) -> (i32, i32) {
    %c0_i32 = arith.constant 0 : i32
    %c0_i32_0 = arith.constant 0 : i32
    %c0_i32_1 = arith.constant 0 : i32
    return %c0_i32, %c0_i32_0 : i32, i32
  }
  func.func @transform_3(%arg0: i32) -> (i32, i32) {
    %c0_i32 = arith.constant 0 : i32
    %c0_i32_0 = arith.constant 0 : i32
    %c0_i32_1 = arith.constant 0 : i32
    return %c0_i32, %c0_i32_0 : i32, i32
  }
  func.func @transform_4(%arg0: i32) -> (i32, i32) {
    %c0_i32 = arith.constant 0 : i32
    %c0_i32_0 = arith.constant 0 : i32
    %c0_i32_1 = arith.constant 0 : i32
    return %c0_i32, %c0_i32_0 : i32, i32
  }
  func.func @transform_5(%arg0: i32) -> (i32, i32) {
    %c0_i32 = arith.constant 0 : i32
    %c0_i32_0 = arith.constant 0 : i32
    %c0_i32_1 = arith.constant 0 : i32
    return %c0_i32, %c0_i32_0 : i32, i32
  }
  func.func @transform_6(%arg0: i32) -> (i32, i32) {
    %c0_i32 = arith.constant 0 : i32
    %c0_i32_0 = arith.constant 0 : i32
    %c0_i32_1 = arith.constant 0 : i32
    return %c0_i32, %c0_i32_0 : i32, i32
  }
  func.func @transform_7(%arg0: i32) -> (i32, i32) {
    %c0_i32 = arith.constant 0 : i32
    %c0_i32_0 = arith.constant 0 : i32
    return %arg0, %c0_i32 : i32, i32
  }
}

</mosaic_0001>

<bundles_post_ra>
// kernel: tpu_custom_call.1
= control target key start
LH: loop header
LB: loop body
LE: loop exit
PB: predicated region body
PF: predicated region fallthrough
CT: control target
= control target key end

     0   :  { %12 = vsyncpa [#allocation3], 0  ;;  %s518_s0 = inlined_call_operand.vmem [shape: f32[8,2], index: 0, kind: input, shape index: {}]   ;;  %s519_s1 = inlined_call_operand.vmem [shape: f32[2,64], index: 1, kind: input, shape index: {}]   ;;  %s520_s2 = inlined_call_operand.vmem [shape: f32[1,64], index: 2, kind: input, shape index: {}]   ;;  %s521_s3 = inlined_call_operand.hbm [shape: f32[64,64], index: 3, kind: input, shape index: {}]   ;;  %s522_s4 = inlined_call_operand.vmem [shape: f32[1,64], index: 4, kind: input, shape index: {}]   ;;  %s523_s5 = inlined_call_operand.hbm [shape: f32[64,128], index: 5, kind: input, shape index: {}]   ;;  %s524_s6 = inlined_call_operand.vmem [shape: f32[1,128], index: 6, kind: input, shape index: {}]   ;;  %s525_s7 = inlined_call_operand.hbm [shape: f32[8,128], index: 7, kind: output, shape index: {}]  }
   0x1   :  { %13 = vsyncpa [#allocation6], 0 }
   0x2   :  { %14 = vsyncpa [#allocation4], 0  ;;  %s422_s24 = smov [#allocation2]  }
   0x3   :  { %s26_s25 = sshll.u32 %s422_s24, 4  ;;  %s27_s25 = int_to_ptr.vmem [resolvable:$true] %s26_s25 }
   0x4   :  { %s364_s26 = scalar_lea.vmem %s27_s25, 1024  ;;  %p369_p1 = scmp.lt.s32.totalorder %s27_s25, %s27_s25 }
   0x5   :  { %p365_p0 = scmp.ne.s32.totalorder %s27_s25, %s364_s26  ;;  %p370_p2 = scmp.lt.s32.totalorder %s364_s26, %s364_s26 }
   0x7   :  { %p371_p3 = por %p370_p2, %p369_p1 }
   0x9   :  { %p372_p4 = pnand %p371_p3, %p365_p0 }
   0xb   :  { %375 = shalt.err (!%p372_p4)
}
   0xc   :  { %s423_s27 = smov 128   ;;  %s424_s28 = smov 8  }
   0xd   :  { %32 = dma.hbm_to_vmem [thread:$0]  %s521_s3, 1024, %s27_s25, [#allocation3], %s423_s27, %s423_s27, %s424_s28  }
   0xe   :  { %s425_s8 = smov [#allocation5]  }
   0xf   :  { %s40_s9 = sshll.u32 %s425_s8, 4  ;;  %s41_s9 = int_to_ptr.vmem [resolvable:$true] %s40_s9 }
  0x10   :  { %s384_s10 = scalar_lea.vmem %s41_s9, 1024  ;;  %p389_p6 = scmp.lt.s32.totalorder %s41_s9, %s41_s9 }
  0x11   :  { %p385_p5 = scmp.ne.s32.totalorder %s41_s9, %s384_s10  ;;  %p390_p7 = scmp.lt.s32.totalorder %s384_s10, %s384_s10 }
  0x13   :  { %p391_p8 = por %p390_p7, %p389_p6 }
  0x15   :  { %p392_p9 = pnand %p391_p8, %p385_p5 }
  0x17   :  { %395 = shalt.err (!%p392_p9)
}
  0x18   :  { %46 = dma.hbm_to_vmem [thread:$0]  %s523_s5, 1024, %s41_s9, [#allocation6], %s423_s27, %s423_s27, %s424_s28  }
  0x19   :  { %416 = dma.done.wait [#allocation3], 1024  }
  0x1a   :  { %417 = vsyncadd [#allocation3], 4294966272 }
  0x1b   :  { %418 = dma.done.wait [#allocation6], 1024  }
  0x1c   :  { %419 = vsyncadd [#allocation6], 4294966272  ;;  %v426_v0 = vmov 0   ;;  %v427_v1 = vmov 0.0   ;;  %v55_v2 = vld [vmem:[%s518_s0] sm:$0xff]  ;;  %v94_v3 = vld [vmem:[#allocation2 + $0x38] sm:$0xff] }
  0x1d   :  { %354 = vset.pattern.permute.xlu0 %v426_v0  ;;  %307 = vmatprep.subr.mxu0 %v427_v1  ;;  %v93_v4 = vld [vmem:[#allocation2 + $0x30] sm:$0xff]  ;;  %v92_v5 = vld [vmem:[#allocation2 + $0x28] sm:$0xff]  ;;  %v91_v6 = vld [vmem:[#allocation2 + $0x20] sm:$0xff]  ;;  %v428_v7 = vmov 1   ;;  %vm429_vm0 = vmmov 0   ;;  %vm102_vm1 = vcmask 523264  }
  0x1e   :  { %326 = vmatprep.subr.mxu1 %v427_v1  ;;  %59 = vperm.xlu0 %354, %v55_v2   ;;  %v90_v8 = vld [vmem:[#allocation2 + $0x18] sm:$0xff]  ;;  %v89_v9 = vld [vmem:[#allocation2 + $0x10] sm:$0xff]  ;;  %v88_v10 = vld [vmem:[#allocation2 + $0x8] sm:$0xff]  ;;  %s430_s20 = smov [#allocation7]  }
  0x1f   :  { %308 = vmatpush3.msra.mxu0 %v94_v3  ;;  %323 = vmatprep.mubr.msk.f32.mxu0 %vm429_vm0, %v427_v1  ;;  %v184_v11 = vld [vmem:[#allocation5 + $0x38] sm:$0xff]  ;;  %v183_v12 = vld [vmem:[#allocation5 + $0x30] sm:$0xff]  ;;  %v87_v13 = vld [vmem:[#allocation2] sm:$0xff]  ;;  %s272_s21 = sshll.u32 %s430_s20, 4  ;;  %s273_s21 = int_to_ptr.vmem [resolvable:$true] %s272_s21 }
  0x20   :  { %309 = vmatprep.subr.mxu0 %v427_v1  ;;  %342 = vmatprep.mubr.msk.f32.mxu1 %vm429_vm0, %v427_v1  ;;  %v182_v14 = vld [vmem:[#allocation5 + $0x28] sm:$0xff]  ;;  %v181_v15 = vld [vmem:[#allocation5 + $0x20] sm:$0xff]  ;;  %v180_v16 = vld [vmem:[#allocation5 + $0x18] sm:$0xff]  ;;  %s396_s22 = scalar_lea.vmem %s273_s21, 128  ;;  %p401_p11 = scmp.lt.s32.totalorder %s273_s21, %s273_s21 }
  0x21   :  { %310 = vmatpush3.msra.mxu0 %v93_v4  ;;  %327 = vmatpush3.msra.mxu1 %v184_v11  ;;  %v282_v18 = vld [vmem:[%s519_s1] ss:$0 sm:$0xff]  ;;  %v283_v19 = vld [vmem:[%s519_s1 + $0x1] ss:$0 sm:$0xff]  ;;  %v179_v27 = vld [vmem:[#allocation5 + $0x10] sm:$0xff]  ;;  %p397_p10 = scmp.ne.s32.totalorder %s273_s21, %s396_s22  ;;  %p402_p12 = scmp.lt.s32.totalorder %s396_s22, %s396_s22 }
  0x22   :  { %311 = vmatprep.subr.mxu0 %v427_v1  ;;  %355 = vset.pattern.permute.xlu0 %v428_v7  ;;  %v284_v23 = vld [vmem:[%s520_s2] ss:$0 sm:$0xff]  ;;  %v178_v28 = vld [vmem:[#allocation5 + $0x8] sm:$0xff] }
  0x23   :  { %312 = vmatpush3.msra.mxu0 %v92_v5  ;;  %69 = vperm.xlu0 %355, %v55_v2   ;;  %v177_v29 = vld [vmem:[#allocation5] sm:$0xff]  ;;  %p403_p13 = por %p402_p12, %p401_p11 }
  0x24   :  { %313 = vmatprep.subr.mxu0 %v427_v1  ;;  %328 = vmatprep.subr.mxu1 %v427_v1  ;;  %v285_v30 = vld [vmem:[%s522_s4] ss:$0 sm:$0xff] }
  0x25   :  { %314 = vmatpush3.msra.mxu0 %v91_v6  ;;  %329 = vmatpush3.msra.mxu1 %v183_v12  ;;  %v287_v35 = vld [vmem:[%s524_s6] ss:$0 sm:$0xff]  ;;  %p404_p0 = pnand %p403_p13, %p397_p10 }
  0x26   :  { %315 = vmatprep.subr.mxu0 %v427_v1  ;;  %330 = vmatprep.subr.mxu1 %v427_v1 }
  0x27   :  { %316 = vmatpush3.msra.mxu0 %v90_v8  ;;  %331 = vmatpush3.msra.mxu1 %v182_v14 }
  0x28   :  { %317 = vmatprep.subr.mxu0 %v427_v1  ;;  %332 = vmatprep.subr.mxu1 %v427_v1 }
  0x29   :  { %318 = vmatpush3.msra.mxu0 %v89_v9  ;;  %333 = vmatpush3.msra.mxu1 %v181_v15 }
  0x2a   :  { %319 = vmatprep.subr.mxu0 %v427_v1  ;;  %334 = vmatprep.subr.mxu1 %v427_v1 }
  0x2b   :  { %320 = vmatpush3.msra.mxu0 %v88_v10  ;;  %335 = vmatpush3.msra.mxu1 %v180_v16 }
  0x2c   :  { %321 = vmatprep.subr.mxu0 %v427_v1  ;;  %336 = vmatprep.subr.mxu1 %v427_v1 }
  0x2d   :  { %322 = vmatpush3.msra.mxu0 %v87_v13  ;;  %337 = vmatpush3.msra.mxu1 %v179_v27 }
  0x2e   :  { %338 = vmatprep.subr.mxu1 %v427_v1 }
  0x2f   :  { %339 = vmatpush3.msra.mxu1 %v178_v28 }
  0x30   :  { %340 = vmatprep.subr.mxu1 %v427_v1 }
  0x31   :  { %341 = vmatpush3.msra.mxu1 %v177_v29 }
  0x99   :  { %v60_v17 = vpop.permute.xlu0 %59 }
  0x9a   :  { %v66_v21 = vmul.f32 %v282_v18, %v60_v17 }
  0x9e   :  { %v70_v20 = vpop.permute.xlu0 %69 }
  0x9f   :  { %v76_v22 = vmul.f32 %v283_v19, %v70_v20 }
  0xa1   :  { %v77_v24 = vadd.f32 %v76_v22, %v66_v21 }
  0xa3   :  { %v85_v25 = vadd.f32 %v284_v23, %v77_v24 }
  0xa5   :  { %v86_v26 = vmax.f32 %v85_v25, 0.0 }
  0xa7   :  { %324 = vmatmul.mubr.msk.f32.vlgmr.msra.gmra.mxu0 %vm102_vm1, %v86_v26 }
 0x167   :  { %v172_v31 = vpop.f32.mrf.mxu0 }
 0x168   :  { %v173_v32 = vadd.f32 %v285_v30, %v172_v31 }
 0x169   :  { %v325_v33 = vpop.f32.mrf.mxu0 }
 0x16a   :  { %v176_v34 = vmax.f32 %v173_v32, 0.0 }
 0x16c   :  { %343 = vmatmul.mubr.msk.f32.vlgmr.msra.gmra.mxu1 %vm102_vm1, %v176_v34 }
 0x22c   :  { %v261_v36 = vpop.f32.mrf.mxu1 }
 0x22d   :  { %v262_v37 = vadd.f32 %v287_v35, %v261_v36 }
 0x22e   :  { %v344_v38 = vpop.f32.mrf.mxu1 }
 0x22f   :  { %265 = vst [vmem:[#allocation7] sm:$0xff] %v262_v37 }
 0x230   :  { %407 = shalt.err (!%p404_p0)
}
 0x231   :  { %275 = dma.vmem_to_hbm [thread:$0]  %s273_s21, 128, %s525_s7, [#allocation4]  }
 0x232   :  { %420 = dma.done.wait [#allocation4], 128  }
 0x233   :  { %421 = vsyncadd [#allocation4], 4294967168 }
 0x234   :  { %279 = vsyncpa [#allocation3], 1 }
 0x235   :  { %280 = vsyncpa [#allocation6], 1 }
 0x236   :  { %281 = vsyncpa [#allocation4], 1 }

</bundles_post_ra>
